<compile_context>
chip_gen: v6e
topology: v6e:2x2x1
jax: 0.10.0
libtpu: 0.0.40
codegen_flags: <defaults>
</compile_context>

<pallas_src>
import math

import numpy as np
import jax
import jax.numpy as jnp
from jax.experimental import pallas as pl
from jax.experimental.pallas import tpu as pltpu


def _round_up(x, m):
    return ((x + m - 1) // m) * m


def _pe_kernel(pos_ref, selcoef_ref, out_ref):
    # pos_ref:     (tR, K)     g folded positions | 1.0 | zero padding
    # selcoef_ref: (K, lanes)  block-diagonal inv_denom rows | phase row | zeros
    # out_ref:     (tR, lanes) lanes = g * d_out (multiple of 128 on the fast path)
    angles = jax.lax.dot_general(
        pos_ref[...], selcoef_ref[...],
        dimension_numbers=(((1,), (0,)), ((), ())),
        preferred_element_type=jnp.float32,
        precision=jax.lax.Precision.HIGHEST,   # multi-pass f32: |pos|~T angles stay accurate
    )
    # sin(x + pi/2) == cos(x): a single transcendental per element.
    out_ref[...] = jnp.sin(angles)


def _choose_fold(d_out):
    """Smallest g with (g*d_out) % 128 == 0; fall back to g=1 only if the
    selection matrix itself would be unreasonably large for VMEM."""
    g = 128 // math.gcd(d_out, 128)
    k_pad = _round_up(g + 1, 8)
    if k_pad * g * d_out * 4 > (4 << 20):
        g, k_pad = 1, 8
    return g, k_pad


def _make_constants(d, T, repeat, offset, g, k_pad):
    """Host-side float64->float32 constants: [selection*inv_denom ; phase ; 0]."""
    rep = 1 if repeat is None else int(repeat)
    d_out = d * rep
    idx = np.arange(offset, offset + d, dtype=np.float64)
    exponent = 2.0 * np.floor(idx / 2.0) / float(d + offset)
    inv_denom = 1.0 / np.power(float(T), exponent)                    # (d,)
    phase_d = np.where(np.arange(d) % 2 == 0, 0.0, np.pi / 2.0)       # cos via +pi/2
    coef = np.tile(inv_denom, rep)                                    # (d_out,)
    phase = np.tile(phase_d, rep)                                     # (d_out,)

    lanes = g * d_out
    selcoef = np.zeros((k_pad, lanes), dtype=np.float64)
    for i in range(g):                                                # expand + scale
        selcoef[i, i * d_out:(i + 1) * d_out] = coef
    selcoef[g, :] = np.tile(phase, g)                                 # phase via ones column
    return d_out, lanes, selcoef.astype(np.float32)


def positional_encoder(batch_positions, d, T=730, repeat=None, offset=0):
    """batch_positions: (B, L) -> (B, L, d * (repeat or 1)) float32."""
    batch_positions = jnp.asarray(batch_positions, jnp.float32)
    B, L = batch_positions.shape
    n_rows = B * L

    rep = 1 if repeat is None else int(repeat)
    g, k_pad = _choose_fold(d * rep)
    d_out, lanes, selcoef = _make_constants(d, T, repeat, offset, g, k_pad)

    # Pad rows to a multiple of 8*g: folded row count stays a multiple of 8
    # (aligned sublanes / matmul M dim); padded rows are sliced off at the end.
    rows_pad = _round_up(n_rows, 8 * g)
    pos_flat = batch_positions.reshape(-1)
    if rows_pad != n_rows:
        pos_flat = jnp.pad(pos_flat, (0, rows_pad - n_rows))
    rows = rows_pad // g
    pos2d = pos_flat.reshape(rows, g)
    parts = [pos2d, jnp.ones((rows, 1), jnp.float32)]
    if k_pad - g - 1:
        parts.append(jnp.zeros((rows, k_pad - g - 1), jnp.float32))
    pos_aug = jnp.concatenate(parts, axis=1)                          # (rows, k_pad)

    # Block sizing from (8,128)-padded VMEM footprints, not logical bytes.
    out_lanes_pad = _round_up(lanes, 128)
    pos_lanes_pad = _round_up(k_pad, 128)
    bytes_per_row = 4 * (out_lanes_pad + pos_lanes_pad)               # per buffer
    target_block_bytes = 4 << 20                                      # ~4 MiB (out+pos)/buffer
    max_tr = max(8, (target_block_bytes // bytes_per_row) // 8 * 8)
    tr_for_grid = _round_up(pl.cdiv(rows, 4), 8)                      # >=4 grid steps when possible
    t_r = min(max_tr, tr_for_grid, rows)
    grid = (pl.cdiv(rows, t_r),)

    cost = pl.CostEstimate(
        flops=2 * rows * k_pad * lanes,
        transcendentals=rows * lanes,
        bytes_accessed=4 * (rows * k_pad + k_pad * lanes + rows * lanes))

    out2d = pl.pallas_call(
        _pe_kernel,
        out_shape=jax.ShapeDtypeStruct((rows, lanes), jnp.float32),
        grid=grid,
        in_specs=[
            pl.BlockSpec((t_r, k_pad), lambda r: (r, 0)),     # folded positions (+ ones + pad)
            pl.BlockSpec((k_pad, lanes), lambda r: (0, 0)),   # selection * inv_denom + phase
        ],
        out_specs=pl.BlockSpec((t_r, lanes), lambda r: (r, 0)),
        compiler_params=pltpu.CompilerParams(
            dimension_semantics=("parallel",),
            vmem_limit_bytes=32 * 1024 * 1024),
        cost_estimate=cost,
    )(pos_aug, jnp.asarray(selcoef))

    out_flat = out2d.reshape(rows_pad, d_out)                         # free reshape
    if rows_pad != n_rows:
        out_flat = out_flat[:n_rows]                                  # drop padded rows
    return out_flat.reshape(B, L, d_out)


def _reference(batch_positions, d, T=730, repeat=None, offset=0):
    """Faithful JAX port of the PyTorch forward (divide + separate sin/cos)."""
    idx = jnp.arange(offset, offset + d, dtype=jnp.float32)
    denom = jnp.power(jnp.float32(T), 2.0 * jnp.floor(idx / 2.0) / (d + offset))
    table = batch_positions[:, :, None] / denom[None, None, :]
    k = jnp.arange(d)
    table = jnp.where((k % 2) == 0, jnp.sin(table), jnp.cos(table))
    if repeat is not None:
        table = jnp.concatenate([table] * repeat, axis=-1)
    return table


if __name__ == "__main__":
    key = jax.random.PRNGKey(0)
    B, L = 2, 8
    # "dates" in [0, T)
    batch_positions = jax.random.uniform(
        key, (B, L), jnp.float32, minval=0.0, maxval=730.0)

    cases = [
        dict(d=32, T=730, repeat=None, offset=0),   # g=4, 128-lane blocks, row padding
        dict(d=32, T=730, repeat=2, offset=0),      # fused repeat (g=2, 128 lanes)
        dict(d=20, T=1000, repeat=None, offset=1),  # g=32 fold (640 lanes) + offset + padding
    ]
    # Tolerance: precomputed reciprocal, sin(x+pi/2) for cos, and the HIGHEST-
    # precision (multi-pass f32) MXU product each contribute a few ulps of the
    # (large, up to ~T) angle, i.e. up to a few 1e-4 absolute in the output.
    for cfg in cases:
        out = jax.block_until_ready(positional_encoder(batch_positions, **cfg))
        ref = _reference(batch_positions, **cfg)
        r = 1 if cfg["repeat"] is None else cfg["repeat"]
        assert out.shape == (B, L, cfg["d"] * r), (out.shape, cfg)
        max_err = float(jnp.max(jnp.abs(out - ref)))
        assert max_err < 1e-3, (cfg, max_err)

    print("KERNEL_OK")
</pallas_src>

<mosaic_0001>
module attributes {stable_mosaic.version = 11 : i64} {
  func.func @_pe_kernel(%arg0: i32, %arg1: memref<8x8xf32, #tpu.memory_space<vmem>>, %arg2: memref<8x128xf32, #tpu.memory_space<vmem>>, %arg3: memref<8x128xf32, #tpu.memory_space<vmem>>) attributes {dimension_semantics = [#tpu.dimension_semantics<parallel>], iteration_bounds = array<i64: 1>, scalar_prefetch = 0 : i64, scratch_operands = 0 : i64, tpu.core_type = #tpu.core_type<tc>, window_params = [{transform_indices = @transform_0, window_bounds = array<i64: 8, 8>}, {pipeline_mode = #tpu.pipeline_mode<synchronous>, transform_indices = @transform_1, window_bounds = array<i64: 8, 128>}, {transform_indices = @transform_2, window_bounds = array<i64: 8, 128>}]} {
    %c0 = arith.constant 0 : index
    %c0_0 = arith.constant 0 : index
    %0 = vector.load %arg1[%c0, %c0_0] : memref<8x8xf32, #tpu.memory_space<vmem>>, vector<8x8xf32>
    %c0_1 = arith.constant 0 : index
    %c0_2 = arith.constant 0 : index
    %1 = vector.load %arg2[%c0_1, %c0_2] : memref<8x128xf32, #tpu.memory_space<vmem>>, vector<8x128xf32>
    %cst = arith.constant dense<0.000000e+00> : vector<8x128xf32>
    %2 = tpu.matmul %0, %1, %cst {dimension_numbers = #tpu.dot_dimension_numbers<[1], [0], [0], [1], [0, 0, 1, 1], [], []>, precision = #tpu.contract_precision<fp32>} : vector<8x8xf32>, vector<8x128xf32>, vector<8x128xf32> -> vector<8x128xf32>
    %3 = math.sin %2 : vector<8x128xf32>
    %c0_3 = arith.constant 0 : index
    %c0_4 = arith.constant 0 : index
    %4 = vector.load %arg3[%c0_3, %c0_4] : memref<8x128xf32, #tpu.memory_space<vmem>>, vector<8x128xf32>
    tpu.vector_store %arg3[%c0_3, %c0_4], %3 {strides = array<i32>} : memref<8x128xf32, #tpu.memory_space<vmem>>, vector<8x128xf32>,
    return
  }
  func.func @transform_0(%arg0: i32) -> (i32, i32) {
    %c0_i32 = arith.constant 0 : i32
    %c0_i32_0 = arith.constant 0 : i32
    return %arg0, %c0_i32 : i32, i32
  }
  func.func @transform_1(%arg0: i32) -> (i32, i32) {
    %c0_i32 = arith.constant 0 : i32
    %c0_i32_0 = arith.constant 0 : i32
    %c0_i32_1 = arith.constant 0 : i32
    return %c0_i32, %c0_i32_0 : i32, i32
  }
  func.func @transform_2(%arg0: i32) -> (i32, i32) {
    %c0_i32 = arith.constant 0 : i32
    %c0_i32_0 = arith.constant 0 : i32
    return %arg0, %c0_i32 : i32, i32
  }
}

</mosaic_0001>

<bundles_post_ra>
// kernel: tpu_custom_call.1
= control target key start
LH: loop header
LB: loop body
LE: loop exit
PB: predicated region body
PF: predicated region fallthrough
CT: control target
= control target key end

     0   :  { %7 = vsyncpa [#allocation3], 0  ;;  %s802_s0 = inlined_call_operand.hbm [shape: f32[8,8], index: 0, kind: input, shape index: {}]   ;;  %s803_s1 = inlined_call_operand.hbm [shape: f32[8,128], index: 1, kind: input, shape index: {}]   ;;  %s804_s2 = inlined_call_operand.hbm [shape: f32[8,128], index: 2, kind: output, shape index: {}]  }
   0x1   :  { %8 = vsyncpa [#allocation6], 0 }
   0x2   :  { %9 = vsyncpa [#allocation4], 0  ;;  %s740_s9 = smov [#allocation2]   ;;  %s741_s11 = smov [#allocation5]  }
   0x3   :  { %s16_s10 = sshll.u32 %s740_s9, 4  ;;  %s26_s12 = sshll.u32 %s741_s11, 4  ;;  %s17_s10 = int_to_ptr.vmem [resolvable:$true] %s16_s10  ;;  %s27_s12 = int_to_ptr.vmem [resolvable:$true] %s26_s12 }
   0x4   :  { %s682_s13 = scalar_lea.vmem %s17_s10, 128  ;;  %p687_p1 = scmp.lt.s32.totalorder %s17_s10, %s17_s10 }
   0x5   :  { %p683_p0 = scmp.ne.s32.totalorder %s17_s10, %s682_s13  ;;  %p688_p2 = scmp.lt.s32.totalorder %s682_s13, %s682_s13 }
   0x7   :  { %p689_p3 = por %p688_p2, %p687_p1 }
   0x9   :  { %p690_p4 = pnand %p689_p3, %p683_p0 }
   0xb   :  { %693 = shalt.err (!%p690_p4)
}
   0xc   :  { %19 = dma.hbm_to_vmem [thread:$0]  %s802_s0, 128, %s17_s10, [#allocation3]  }
   0xd   :  { %s702_s16 = scalar_lea.vmem %s27_s12, 128  ;;  %p707_p6 = scmp.lt.s32.totalorder %s27_s12, %s27_s12 }
   0xe   :  { %p703_p5 = scmp.ne.s32.totalorder %s27_s12, %s702_s16  ;;  %p708_p7 = scmp.lt.s32.totalorder %s702_s16, %s702_s16 }
  0x10   :  { %p709_p8 = por %p708_p7, %p707_p6 }
  0x12   :  { %p710_p9 = pnand %p709_p8, %p703_p5 }
  0x14   :  { %713 = shalt.err (!%p710_p9)
}
  0x15   :  { %29 = dma.hbm_to_vmem [thread:$0]  %s803_s1, 128, %s27_s12, [#allocation6]  }
  0x16   :  { %734 = dma.done.wait [#allocation3], 128  }
  0x17   :  { %735 = vsyncadd [#allocation3], 4294967168 }
  0x18   :  { %736 = dma.done.wait [#allocation6], 128  }
  0x19   :  { %737 = vsyncadd [#allocation6], 4294967168  ;;  %v742_v0 = vmov 0.0   ;;  %vm743_vm0 = vmmov 0   ;;  %vm38_vm1 = vcmask 64512   ;;  %v37_v1 = vld [vmem:[#allocation5] sm:$0xff] }
  0x1a   :  { %625 = vmatprep.subr.mxu0 %v742_v0  ;;  %630 = vmatprep.subr.mxu1 %v742_v0  ;;  %v36_v2 = vld [vmem:[#allocation2] sm:$0xff]  ;;  %v73_v3 = vand.u32 4294901760, %v37_v1  ;;  %v744_v41 = vmov 683565275   ;;  %v745_v43 = vmov 2475754826  }
  0x1b   :  { %627 = vmatprep.mubr.msk.f32.mxu0 %vm743_vm0, %v742_v0  ;;  %632 = vmatprep.mubr.msk.f32.mxu1 %vm743_vm0, %v742_v0  ;;  %v40_v4 = vsel %vm38_vm1, %v36_v2, 0  ;;  %v746_v46 = vmov 2131351028   ;;  %v747_v49 = vmov 2102212464   ;;  %s750_s0 = smov [#allocation7]  }
  0x1c   :  { %v108_v5 = vand.u32 4294901760, %v40_v4  ;;  %626 = vmatpush3.msra.mxu0 %v73_v3  ;;  %v150_v6 = vsub.f32 %v37_v1, %v73_v3  ;;  %v748_v52 = vmov 920167782   ;;  %v749_v55 = vmov 1326507024   ;;  %s599_s1 = sshll.u32 %s750_s0, 4  ;;  %s600_s1 = int_to_ptr.vmem [resolvable:$true] %s599_s1 }
  0x1d   :  { %635 = vmatprep.subr.mxu0 %v742_v0  ;;  %s714_s19 = scalar_lea.vmem %s600_s1, 128  ;;  %p719_p11 = scmp.lt.s32.totalorder %s600_s1, %s600_s1 }
  0x1e   :  { %v109_v7 = vsub.f32 %v40_v4, %v108_v5  ;;  %v151_v8 = vand.u32 4294901760, %v150_v6  ;;  %p715_p10 = scmp.ne.s32.totalorder %s600_s1, %s714_s19  ;;  %p720_p12 = scmp.lt.s32.totalorder %s714_s19, %s714_s19 }
  0x20   :  { %v110_v9 = vand.u32 4294901760, %v109_v7  ;;  %v152_v10 = vsub.f32 %v150_v6, %v151_v8  ;;  %p721_p13 = por %p720_p12, %p719_p11 }
  0x22   :  { %v111_v11 = vsub.f32 %v109_v7, %v110_v9  ;;  %v153_v12 = vand.u32 4294901760, %v152_v10  ;;  %p722_p0 = pnand %p721_p13, %p715_p10 }
  0x24   :  { %v112_v13 = vand.u32 4294901760, %v111_v11  ;;  %631 = vmatpush3.msra.mxu1 %v153_v12 }
  0x25   :  { %633 = vmatmul.mubr.f32.vlgmr.msra.gmra.mxu1 %v108_v5  ;;  %640 = vmatprep.subr.mxu1 %v742_v0 }
  0x26   :  { %628 = vmatmul.mubr.f32.vlgmr.msra.gmra.mxu0 %v112_v13  ;;  %641 = vmatpush3.msra.mxu1 %v73_v3 }
  0x27   :  { %636 = vmatpush3.msra.mxu0 %v150_v6  ;;  %637 = vmatprep.mubr.msk.f32.mxu0 %vm743_vm0, %v742_v0 }
  0x28   :  { %642 = vmatprep.mubr.msk.f32.mxu1 %vm743_vm0, %v742_v0  ;;  %645 = vmatprep.subr.mxu0 %v742_v0 }
  0x29   :  { %643 = vmatmul.mubr.f32.vlgmr.msra.gmra.mxu1 %v110_v9  ;;  %650 = vmatprep.subr.mxu1 %v742_v0 }
  0x2a   :  { %638 = vmatmul.mubr.f32.vlgmr.msra.gmra.mxu0 %v109_v7  ;;  %651 = vmatpush3.msra.mxu1 %v73_v3 }
  0x2b   :  { %646 = vmatpush3.msra.mxu0 %v151_v8  ;;  %647 = vmatprep.mubr.msk.f32.mxu0 %vm743_vm0, %v742_v0 }
  0x2c   :  { %652 = vmatprep.mubr.msk.f32.mxu1 %vm743_vm0, %v742_v0 }
  0x2d   :  { %653 = vmatmul.mubr.f32.vlgmr.msra.gmra.mxu1 %v108_v5 }
  0x2e   :  { %648 = vmatmul.mubr.f32.vlgmr.msra.gmra.mxu0 %v108_v5 }
  0xe5   :  { %v190_v15 = vpop.f32.mrf.mxu1 }
  0xe6   :  { %v114_v14 = vpop.f32.mrf.mxu0 }
  0xe7   :  { %v634_v17 = vpop.f32.mrf.mxu1  ;;  %v191_v18 = vadd.f32 %v190_v15, %v114_v14 }
  0xe8   :  { %v629_v16 = vpop.f32.mrf.mxu0 }
  0xe9   :  { %v338_v20 = vpop.f32.mrf.mxu1 }
  0xea   :  { %v264_v19 = vpop.f32.mrf.mxu0 }
  0xeb   :  { %v265_v21 = vadd.f32 %v264_v19, %v191_v18  ;;  %v644_v23 = vpop.f32.mrf.mxu1 }
  0xec   :  { %v639_v22 = vpop.f32.mrf.mxu0 }
  0xed   :  { %v339_v24 = vadd.f32 %v338_v20, %v265_v21  ;;  %v484_v26 = vpop.f32.mrf.mxu1 }
  0xee   :  { %v412_v25 = vpop.f32.mrf.mxu0 }
  0xef   :  { %v413_v27 = vadd.f32 %v412_v25, %v339_v24  ;;  %v654_v29 = vpop.f32.mrf.mxu1 }
  0xf0   :  { %v649_v28 = vpop.f32.mrf.mxu0 }
  0xf1   :  { %v778_v30 = vadd.f32 %v484_v26, %v413_v27 }
  0xf3   :  { %v491_v31 = vand.u32 2139095040, %v778_v30  ;;  %v488_v35 = vand.u32 2147483647, %v778_v30  ;;  %vm490_vm9 = vcmp.lt.s32.totalorder %v778_v30, 0  ;;  %vm580_vm14 = vweird.f32 %v778_v30 }
  0xf5   :  { %v492_v32 = vshrl.u32 %v491_v31, 23  ;;  %v495_v38 = vand.u32 8388607, %v488_v35  ;;  %vm489_vm10 = vcmp.le.f32.partialorder %v488_v35, 0.7853982 }
  0xf7   :  { %v609_v33 = vadd.s32 4294967169, %v492_v32  ;;  %v496_v57 = vor.u32 8388608, %v495_v38 }
  0xf9   :  { %v498_v34 = vadd.s32 1, %v609_v33  ;;  %v536_v7 = vshll.u32 %v496_v57, 8 }
  0xfb   :  { %vm499_vm2 = vcmp.gt.s32.totalorder %v498_v34, 0 }
  0xfc   :  { %v500_v36 = vsel %vm499_vm2, %v498_v34, 0 }
  0xfd   :  { %v502_v37 = vand.u32 31, %v500_v36  ;;  %v501_v40 = vshrl.u32 %v500_v36, 5 }
  0xff   :  { %v503_v39 = vsub.s32 32, %v502_v37  ;;  %v505_v42 = vshll.u32 %v744_v41, %v502_v37  ;;  %v508_v44 = vshll.u32 %v745_v43, %v502_v37  ;;  %v511_v48 = vshll.u32 %v746_v46, %v502_v37 }
 0x100   :  { %v514_v51 = vshll.u32 %v747_v49, %v502_v37  ;;  %v517_v54 = vshll.u32 %v748_v52, %v502_v37  ;;  %vm520_vm3 = vcmp.lt.s32.totalorder %v501_v40, 1  ;;  %vm523_vm4 = vcmp.lt.s32.totalorder %v501_v40, 4 }
 0x101   :  { %v506_v45 = vshrl.u32 %v745_v43, %v503_v39  ;;  %v509_v47 = vshrl.u32 %v746_v46, %v503_v39  ;;  %v512_v50 = vshrl.u32 %v747_v49, %v503_v39  ;;  %v515_v53 = vshrl.u32 %v748_v52, %v503_v39 }
 0x102   :  { %v518_v56 = vshrl.u32 %v749_v55, %v503_v39  ;;  %v504_v2 = vshrl.u32 %v744_v41, %v503_v39  ;;  %vm522_vm5 = vcmp.lt.s32.totalorder %v501_v40, 3  ;;  %vm521_vm6 = vcmp.lt.s32.totalorder %v501_v40, 2 }
 0x103   :  { %v507_v58 = vor.u32 %v506_v45, %v505_v42  ;;  %v510_v59 = vor.u32 %v509_v47, %v508_v44  ;;  %v513_v60 = vor.u32 %v512_v50, %v511_v48  ;;  %v516_v61 = vor.u32 %v515_v53, %v514_v51 }
 0x104   :  { %v519_v62 = vor.u32 %v518_v56, %v517_v54 }
 0x105   :  { %v525_v63 = vsel %vm523_vm4, %v513_v60, 2102212464  ;;  %v528_v0 = vsel %vm520_vm3, %v507_v58, %v510_v59  ;;  %v532_v1 = vsel %vm520_vm3, %v510_v59, %v513_v60  ;;  %v529_v3 = vsel %vm523_vm4, %v516_v61, 920167782 }
 0x106   :  { %v533_v4 = vsel %vm523_vm4, %v519_v62, 1326507024  ;;  %v530_v5 = vsel %vm522_vm5, %v513_v60, %v529_v3  ;;  %v524_v8 = vsel %vm520_vm3, %v504_v2, %v507_v58  ;;  %v526_v9 = vsel %vm522_vm5, %v510_v59, %v525_v63 }
 0x107   :  { %v534_v6 = vsel %vm522_vm5, %v516_v61, %v533_v4  ;;  %v531_v10 = vsel %vm521_vm6, %v528_v0, %v530_v5  ;;  %v527_v16 = vsel %vm521_vm6, %v524_v8, %v526_v9 }
 0x108   :  { %v535_v11 = vsel %vm521_vm6, %v532_v1, %v534_v6  ;;  %v787_v14 = vmul.u32.u64.low %v536_v7, %v531_v10  ;;  %v788_v15 = vmul.u32.u64.high %v536_v7, %v531_v10, %v787_v14  ;;  %v543_v18 = vmul.u32 %v536_v7, %v527_v16 }
 0x109   :  { %v784_v12 = vmul.u32.u64.low %v536_v7, %v535_v11  ;;  %v785_v13 = vmul.u32.u64.high %v536_v7, %v535_v11, %v784_v12 }
 0x10a   :  { %v546_v17 = vadd.s32 1, %v788_v15 }
 0x10b   :  { %vm545_vm7 = vc.u32 %v785_v13, %v787_v14  ;;  %v544_v31 = vadd.s32 %v787_v14, %v785_v13 }
 0x10c   :  { %v547_v19 = vsel %vm545_vm7, %v546_v17, %v788_v15 }
 0x10d   :  { %v548_v20 = vadd.s32 %v547_v19, %v543_v18 }
 0x10f   :  { %v549_v21 = vadd.s32 536870912, %v548_v20 }
 0x111   :  { %v550_v22 = vshrl.u32 %v549_v21, 30 }
 0x113   :  { %v551_v23 = vshll.u32 %v550_v22, 30  ;;  %v574_v45 = vsub.s32 4, %v550_v22 }
 0x115   :  { %v552_v24 = vsub.s32 %v548_v20, %v551_v23  ;;  %v575_v48 = vsel %vm490_vm9, %v574_v45, %v550_v22 }
 0x116   :  { %v577_v49 = vsel %vm489_vm10, 0, %v575_v48 }
 0x117   :  { %v554_v25 = vsub.s32 0, %v552_v24  ;;  %v581_v50 = vadd.s32 3, %v577_v49 }
 0x119   :  { %v610_v26 = vmin.u32 %v554_v25, %v552_v24  ;;  %v582_v51 = vand.u32 3, %v581_v50 }
 0x11b   :  { %v556_v27 = vclz %v610_v26  ;;  %vm587_vm11 = vcmp.eq.s32.totalorder %v582_v51, 2  ;;  %vm584_vm12 = vcmp.eq.s32.totalorder %v582_v51, 0  ;;  %vm583_vm13 = vcmp.lt.s32.totalorder %v582_v51, 2 }
 0x11d   :  { %v611_v28 = vadd.s32 4294967294, %v556_v27 }
 0x11f   :  { %vm612_vm8 = vcmp.lt.s32.totalorder %v611_v28, 0 }
 0x120   :  { %v559_v29 = vsel %vm612_vm8, 0, %v611_v28 }
 0x121   :  { %v560_v32 = vsub.s32 32, %v559_v29  ;;  %v564_v33 = vsub.s32 4294967266, %v559_v29  ;;  %v561_v34 = vshll.u32 %v552_v24, %v559_v29 }
 0x123   :  { %v562_v36 = vshrl.u32 %v544_v31, %v560_v32  ;;  %v565_v37 = vadd.s32 127, %v564_v33 }
 0x125   :  { %v563_v38 = vor.u32 %v562_v36, %v561_v34  ;;  %v566_v39 = vshll.u32 %v565_v37, 23 }
 0x127   :  { %v567_v40 = vor.u32 4788187, %v566_v39  ;;  %v570_v42 = vcvt.s32.f32 %v563_v38 }
 0x129   :  { %v568_v41 = vand.u32 2147483647, %v567_v40 }
 0x12b   :  { %v571_v43 = vmul.f32 %v570_v42, %v568_v41 }
 0x12d   :  { %v572_v44 = vxor.u32 2147483648, %v571_v43 }
 0x12f   :  { %v573_v46 = vsel %vm490_vm9, %v572_v44, %v571_v43 }
 0x130   :  { %v576_v47 = vsel %vm489_vm10, %v778_v30, %v573_v46 }
 0x131   :  { %670 = vcosq.f32 %v576_v47 }
 0x132   :  { %672 = vsinq.f32 %v576_v47 }
 0x13e   :  { %v671_v52 = vpop.eup %670 }
 0x13f   :  { %v673_v53 = vpop.eup %672  ;;  %v588_v54 = vxor.u32 2147483648, %v671_v52 }
 0x140   :  { %v585_v55 = vxor.u32 2147483648, %v673_v53 }
 0x141   :  { %v589_v56 = vsel %vm587_vm11, %v588_v54, %v673_v53 }
 0x142   :  { %v586_v57 = vsel %vm584_vm12, %v671_v52, %v585_v55 }
 0x143   :  { %v590_v35 = vsel %vm583_vm13, %v586_v57, %v589_v56 }
 0x144   :  { %v591_v58 = vsel %vm580_vm14, nan, %v590_v35 }
 0x145   :  { %592 = vst [vmem:[#allocation7] sm:$0xff] %v591_v58 }
 0x146   :  { %725 = shalt.err (!%p722_p0)
}
 0x147   :  { %602 = dma.vmem_to_hbm [thread:$0]  %s600_s1, 128, %s804_s2, [#allocation4]  }
 0x148   :  { %738 = dma.done.wait [#allocation4], 128  }
 0x149   :  { %739 = vsyncadd [#allocation4], 4294967168 }
 0x14a   :  { %606 = vsyncpa [#allocation3], 1 }
 0x14b   :  { %607 = vsyncpa [#allocation6], 1 }
 0x14c   :  { %608 = vsyncpa [#allocation4], 1 }

</bundles_post_ra>
